<compile_context>
chip_gen: v6e
topology: v6e:2x2x1
jax: 0.10.0
libtpu: 0.0.40
codegen_flags: <defaults>
</compile_context>

<pallas_src>
import functools
import math

import jax
import jax.numpy as jnp
import numpy as np
from jax.experimental import pallas as pl
from jax.experimental.pallas import tpu as pltpu

LANE = 128


# ----------------------------------------------------------------------------
# helpers
# ----------------------------------------------------------------------------
def _round_up(v, m):
    return ((v + m - 1) // m) * m


def _pad2d(a, rows, cols):
    return jnp.pad(a, ((0, rows - a.shape[0]), (0, cols - a.shape[1])))


def _choose_node_tiling(n, *, max_tm=512, max_tk=1024, max_pad_frac=0.08):
    """Pick (n_padded, tm, tk): tiles are multiples of 128 that divide
    n_padded, with node padding kept small (adjacency HBM traffic is the
    binding resource on every TPU generation)."""
    n_min = _round_up(n, LANE)
    tk, n_p = LANE, n_min
    for cand in range(min(max_tk, n_min), LANE - 1, -LANE):
        cand_np = _round_up(n, cand)
        if cand_np - n_min <= max_pad_frac * n_min:
            tk, n_p = cand, cand_np
            break
    tm = LANE
    for cand in range(min(max_tm, n_p), LANE - 1, -LANE):
        if n_p % cand == 0:
            tm = cand
            break
    # prefer >= 2 row tiles so the 'parallel' axis can feed both v7x cores
    if n_p // tm < 2:
        for cand in range(tm - LANE, LANE - 1, -LANE):
            if n_p % cand == 0:
                tm = cand
                break
    return n_p, tm, tk


# ----------------------------------------------------------------------------
# kernel A: hoisted support matmul   support = x @ W   (runs once per layer)
# ----------------------------------------------------------------------------
def _dense_kernel(x_ref, w_ref, o_ref):
    o_ref[...] = jnp.dot(x_ref[...], w_ref[...],
                         preferred_element_type=jnp.float32).astype(o_ref.dtype)


def _dense(x_p, w_p, *, tm, out_dtype):
    n_p, f = x_p.shape
    h_p = w_p.shape[1]
    return pl.pallas_call(
        _dense_kernel,
        out_shape=jax.ShapeDtypeStruct((n_p, h_p), out_dtype),
        grid_spec=pltpu.PrefetchScalarGridSpec(
            num_scalar_prefetch=0,
            grid=(n_p // tm,),
            in_specs=[pl.BlockSpec((tm, f), lambda i: (i, 0)),    # x rows
                      pl.BlockSpec((f, h_p), lambda i: (0, 0))],  # W resident
            out_specs=pl.BlockSpec((tm, h_p), lambda i: (i, 0)),
        ),
        compiler_params=pltpu.CompilerParams(
            dimension_semantics=("parallel",)),
    )(x_p, w_p)


# ----------------------------------------------------------------------------
# kernel B: adjacency-streaming graph conv
#   out = act(adj @ support + b) [@ W_next]
# ----------------------------------------------------------------------------
def _graph_conv_kernel(adj_ref, s_ref, b_ref, *rest, apply_relu, fuse_w):
    if fuse_w:
        w_ref, out_ref, acc_ref = rest
    else:
        out_ref, acc_ref = rest

    k = pl.program_id(1)

    @pl.when(k == 0)
    def _init():
        acc_ref[...] = jnp.zeros_like(acc_ref)

    # adj tile (tm, tk) @ support slab (tk, C) accumulated in f32 scratch.
    acc_ref[...] += jnp.dot(adj_ref[...], s_ref[...],
                            preferred_element_type=jnp.float32)

    @pl.when(k == pl.num_programs(1) - 1)
    def _finalize():
        r = acc_ref[...] + b_ref[...]            # f32 bias add (VPU epilogue)
        if apply_relu:
            r = jnp.maximum(r, 0.0)              # fused ReLU
        if fuse_w:
            # Fused next-layer projection: kernel is HBM-bound on adj, so this
            # per-row-tile (tm, C) x (C, C_out) matmul rides in MXU slack.
            r = jnp.dot(r.astype(w_ref.dtype), w_ref[...],
                        preferred_element_type=jnp.float32)
        out_ref[...] = r.astype(out_ref.dtype)


def _graph_conv(adj_p, support_p, b_p, *, w_next, apply_relu, tm, tk,
                out_dtype):
    """Tiled  act(adj_p @ support_p + b_p) [@ w_next].  Operands pre-padded."""
    n_p = adj_p.shape[0]
    c_in = support_p.shape[1]
    c_out = w_next.shape[1] if w_next is not None else c_in
    fuse_w = w_next is not None
    grid = (n_p // tm, n_p // tk)

    in_specs = [
        pl.BlockSpec((tm, tk), lambda i, k: (i, k)),     # adj tile (streamed)
        pl.BlockSpec((tk, c_in), lambda i, k: (k, 0)),   # support slab
        pl.BlockSpec((1, c_in), lambda i, k: (0, 0)),    # bias (resident)
    ]
    args = (adj_p, support_p, b_p)
    if fuse_w:
        in_specs.append(pl.BlockSpec((c_in, c_out), lambda i, k: (0, 0)))
        args = args + (w_next,)

    itemsize = lambda a: np.dtype(a.dtype).itemsize
    flops = 2 * n_p * n_p * c_in + (2 * n_p * c_in * c_out if fuse_w else 0)
    bytes_accessed = (adj_p.size * itemsize(adj_p)
                      + support_p.size * itemsize(support_p)
                      + b_p.size * itemsize(b_p)
                      + (w_next.size * itemsize(w_next) if fuse_w else 0)
                      + n_p * c_out * np.dtype(out_dtype).itemsize)

    return pl.pallas_call(
        functools.partial(_graph_conv_kernel, apply_relu=apply_relu,
                          fuse_w=fuse_w),
        out_shape=jax.ShapeDtypeStruct((n_p, c_out), out_dtype),
        grid_spec=pltpu.PrefetchScalarGridSpec(
            num_scalar_prefetch=0,
            grid=grid,
            in_specs=in_specs,
            out_specs=pl.BlockSpec((tm, c_out), lambda i, k: (i, 0)),
            scratch_shapes=[pltpu.VMEM((tm, c_in), jnp.float32)],
        ),
        compiler_params=pltpu.CompilerParams(
            dimension_semantics=("parallel", "arbitrary"),
            vmem_limit_bytes=32 * 1024 * 1024,
        ),
        cost_estimate=pl.CostEstimate(
            flops=flops, transcendentals=0, bytes_accessed=bytes_accessed),
    )(*args)


# ----------------------------------------------------------------------------
# full 2-layer GCN forward
# ----------------------------------------------------------------------------
@functools.partial(jax.jit, static_argnames=("compute_dtype",))
def gcn_forward(x, adj, w1, b1, w2, b2, *, compute_dtype=jnp.bfloat16):
    n, f_in = x.shape
    hidden = w1.shape[1]
    out_dim = w2.shape[1]

    hp = _round_up(hidden, LANE)       # lane-dense hidden width
    op = _round_up(out_dim, LANE)      # lane-dense output width
    n_p, tm, tk = _choose_node_tiling(n)

    # pad once; padded rows/cols are exact zeros and never reach real outputs
    x_p = _pad2d(x, n_p, f_in).astype(compute_dtype)
    adj_p = _pad2d(adj, n_p, n_p).astype(compute_dtype)
    # TODO(synk): on v7x a per-row-scaled fp8 adj stream would ~halve the
    #             binding HBM traffic; left disabled pending accuracy checks.
    w1_p = _pad2d(w1, f_in, hp).astype(compute_dtype)
    b1_p = _pad2d(b1.reshape(1, -1), 1, hp).astype(jnp.float32)
    w2_p = _pad2d(w2, hp, op).astype(compute_dtype)
    b2_p = _pad2d(b2.reshape(1, -1), 1, op).astype(jnp.float32)

    # support1 = x @ W1, hoisted: computed once, not once per adj row tile
    support1 = _dense(x_p, w1_p, tm=tm, out_dtype=compute_dtype)

    # layer 1 (+ fused next-layer projection, h never hits HBM):
    #   s2 = relu(adj @ support1 + b1) @ W2
    s2 = _graph_conv(adj_p, support1, b1_p, w_next=w2_p, apply_relu=True,
                     tm=tm, tk=tk, out_dtype=compute_dtype)

    # dropout: identity (inference/eval mode)

    # layer 2: pure adjacency stream   out = adj @ s2 + b2
    out_p = _graph_conv(adj_p, s2, b2_p, w_next=None, apply_relu=False,
                        tm=tm, tk=tk, out_dtype=jnp.float32)

    return out_p[:n, :out_dim]


# ----------------------------------------------------------------------------
# parameter init (reproduces GraphConvolution.reset_parameters) + reference
# ----------------------------------------------------------------------------
def init_gcn_params(key, input_dim, hidden_dim, out_dim):
    k1, k2, k3, k4 = jax.random.split(key, 4)
    stdv1 = 1.0 / math.sqrt(hidden_dim)
    stdv2 = 1.0 / math.sqrt(out_dim)
    w1 = jax.random.uniform(k1, (input_dim, hidden_dim), jnp.float32,
                            minval=-stdv1, maxval=stdv1)
    b1 = jax.random.uniform(k2, (hidden_dim,), jnp.float32,
                            minval=-stdv1, maxval=stdv1)
    w2 = jax.random.uniform(k3, (hidden_dim, out_dim), jnp.float32,
                            minval=-stdv2, maxval=stdv2)
    b2 = jax.random.uniform(k4, (out_dim,), jnp.float32,
                            minval=-stdv2, maxval=stdv2)
    return w1, b1, w2, b2


def gcn_reference(x, adj, w1, b1, w2, b2):
    h = jnp.maximum(adj @ (x @ w1) + b1, 0.0)
    return adj @ (h @ w2) + b2


# ----------------------------------------------------------------------------
# main
# ----------------------------------------------------------------------------
if __name__ == "__main__":
    key = jax.random.PRNGKey(0)
    k_x, k_adj, k_param = jax.random.split(key, 3)

    n_nodes, input_dim, hidden_dim, out_dim = 16, 8, 32, 16

    x = jax.random.normal(k_x, (n_nodes, input_dim), jnp.float32)

    # symmetric row-normalized adjacency (dense), deterministic
    a = jax.random.uniform(k_adj, (n_nodes, n_nodes), jnp.float32)
    a = (a + a.T) * 0.5 + jnp.eye(n_nodes, dtype=jnp.float32)
    adj = a / jnp.sum(a, axis=1, keepdims=True)

    w1, b1, w2, b2 = init_gcn_params(k_param, input_dim, hidden_dim, out_dim)

    ref = gcn_reference(x, adj, w1, b1, w2, b2)

    # f32 MXU path: strict correctness check
    out_f32 = jax.block_until_ready(
        gcn_forward(x, adj, w1, b1, w2, b2, compute_dtype=jnp.float32))
    assert out_f32.shape == (n_nodes, out_dim)
    assert jnp.allclose(out_f32, ref, atol=1e-4, rtol=1e-4), "f32 mismatch"

    # bf16 MXU inputs + f32 accumulation (production default): loose tolerance
    out_bf16 = jax.block_until_ready(
        gcn_forward(x, adj, w1, b1, w2, b2, compute_dtype=jnp.bfloat16))
    assert out_bf16.shape == (n_nodes, out_dim)
    assert jnp.allclose(out_bf16, ref, atol=5e-2, rtol=5e-2), "bf16 mismatch"

    print("KERNEL_OK")
</pallas_src>

<mosaic_0001>
module attributes {stable_mosaic.version = 11 : i64} {
  func.func @_graph_conv_kernel(%arg0: i32, %arg1: i32, %arg2: memref<128x128xf32, #tpu.memory_space<vmem>>, %arg3: memref<128x128xf32, #tpu.memory_space<vmem>>, %arg4: memref<1x128xf32, #tpu.memory_space<vmem>>, %arg5: memref<128x128xf32, #tpu.memory_space<vmem>>, %arg6: memref<128x128xf32, #tpu.memory_space<vmem>>, %arg7: memref<128x128xf32, #tpu.memory_space<vmem>>) attributes {dimension_semantics = [#tpu.dimension_semantics<parallel>, #tpu.dimension_semantics<arbitrary>], iteration_bounds = array<i64: 1, 1>, scalar_prefetch = 0 : i64, scratch_operands = 1 : i64, tpu.core_type = #tpu.core_type<tc>, window_params = [{transform_indices = @transform_0, window_bounds = array<i64: 128, 128>}, {transform_indices = @transform_1, window_bounds = array<i64: 128, 128>}, {pipeline_mode = #tpu.pipeline_mode<synchronous>, transform_indices = @transform_2, window_bounds = array<i64: 1, 128>}, {pipeline_mode = #tpu.pipeline_mode<synchronous>, transform_indices = @transform_3, window_bounds = array<i64: 128, 128>}, {transform_indices = @transform_4, window_bounds = array<i64: 128, 128>}]} {
    %c0_i32 = arith.constant 0 : i32
    %0 = arith.cmpi eq, %arg1, %c0_i32 : i32
    %1 = arith.extui %0 : i1 to i32
    %c0_i32_0 = arith.constant 0 : i32
    %2 = arith.cmpi ne, %1, %c0_i32_0 : i32
    scf.if %2 {
      %cst_10 = arith.constant 0.000000e+00 : f32
      %12 = vector.broadcast %cst_10 : f32 to vector<128x128xf32>
      %c0_11 = arith.constant 0 : index
      %c0_12 = arith.constant 0 : index
      %13 = vector.load %arg7[%c0_11, %c0_12] : memref<128x128xf32, #tpu.memory_space<vmem>>, vector<128x128xf32>
      tpu.vector_store %arg7[%c0_11, %c0_12], %12 {strides = array<i32>} : memref<128x128xf32, #tpu.memory_space<vmem>>, vector<128x128xf32>,
    } else {
    }
    %c0 = arith.constant 0 : index
    %c0_1 = arith.constant 0 : index
    %3 = vector.load %arg7[%c0, %c0_1] : memref<128x128xf32, #tpu.memory_space<vmem>>, vector<128x128xf32>
    %c0_2 = arith.constant 0 : index
    %c0_3 = arith.constant 0 : index
    %4 = vector.load %arg2[%c0_2, %c0_3] : memref<128x128xf32, #tpu.memory_space<vmem>>, vector<128x128xf32>
    %c0_4 = arith.constant 0 : index
    %c0_5 = arith.constant 0 : index
    %5 = vector.load %arg3[%c0_4, %c0_5] : memref<128x128xf32, #tpu.memory_space<vmem>>, vector<128x128xf32>
    %cst = arith.constant dense<0.000000e+00> : vector<128x128xf32>
    %6 = tpu.matmul %4, %5, %cst {dimension_numbers = #tpu.dot_dimension_numbers<[1], [0], [0], [1], [0, 0, 1, 1], [], []>} : vector<128x128xf32>, vector<128x128xf32>, vector<128x128xf32> -> vector<128x128xf32>
    %7 = arith.addf %3, %6 : vector<128x128xf32>
    %c0_6 = arith.constant 0 : index
    %c0_7 = arith.constant 0 : index
    %8 = vector.load %arg7[%c0_6, %c0_7] : memref<128x128xf32, #tpu.memory_space<vmem>>, vector<128x128xf32>
    tpu.vector_store %arg7[%c0_6, %c0_7], %7 {strides = array<i32>} : memref<128x128xf32, #tpu.memory_space<vmem>>, vector<128x128xf32>,
    %c0_i32_8 = arith.constant 0 : i32
    %9 = arith.cmpi eq, %arg1, %c0_i32_8 : i32
    %10 = arith.extui %9 : i1 to i32
    %c0_i32_9 = arith.constant 0 : i32
    %11 = arith.cmpi ne, %10, %c0_i32_9 : i32
    scf.if %11 {
      %c0_10 = arith.constant 0 : index
      %c0_11 = arith.constant 0 : index
      %12 = vector.load %arg7[%c0_10, %c0_11] : memref<128x128xf32, #tpu.memory_space<vmem>>, vector<128x128xf32>
      %c0_12 = arith.constant 0 : index
      %c0_13 = arith.constant 0 : index
      %13 = vector.load %arg4[%c0_12, %c0_13] : memref<1x128xf32, #tpu.memory_space<vmem>>, vector<1x128xf32>
      %14 = vector.broadcast %13 : vector<1x128xf32> to vector<128x128xf32>
      %15 = arith.addf %12, %14 : vector<128x128xf32>
      %cst_14 = arith.constant 0.000000e+00 : f32
      %16 = vector.broadcast %cst_14 : f32 to vector<128x128xf32>
      %17 = arith.maximumf %15, %16 : vector<128x128xf32>
      %c0_15 = arith.constant 0 : index
      %c0_16 = arith.constant 0 : index
      %18 = vector.load %arg5[%c0_15, %c0_16] : memref<128x128xf32, #tpu.memory_space<vmem>>, vector<128x128xf32>
      %cst_17 = arith.constant dense<0.000000e+00> : vector<128x128xf32>
      %19 = tpu.matmul %17, %18, %cst_17 {dimension_numbers = #tpu.dot_dimension_numbers<[1], [0], [0], [1], [0, 0, 1, 1], [], []>} : vector<128x128xf32>, vector<128x128xf32>, vector<128x128xf32> -> vector<128x128xf32>
      %c0_18 = arith.constant 0 : index
      %c0_19 = arith.constant 0 : index
      %20 = vector.load %arg6[%c0_18, %c0_19] : memref<128x128xf32, #tpu.memory_space<vmem>>, vector<128x128xf32>
      tpu.vector_store %arg6[%c0_18, %c0_19], %19 {strides = array<i32>} : memref<128x128xf32, #tpu.memory_space<vmem>>, vector<128x128xf32>,
    } else {
    }
    return
  }
  func.func @transform_0(%arg0: i32, %arg1: i32) -> (i32, i32) {
    %c0_i32 = arith.constant 0 : i32
    return %arg0, %arg1 : i32, i32
  }
  func.func @transform_1(%arg0: i32, %arg1: i32) -> (i32, i32) {
    %c0_i32 = arith.constant 0 : i32
    %c0_i32_0 = arith.constant 0 : i32
    return %arg1, %c0_i32 : i32, i32
  }
  func.func @transform_2(%arg0: i32, %arg1: i32) -> (i32, i32) {
    %c0_i32 = arith.constant 0 : i32
    %c0_i32_0 = arith.constant 0 : i32
    %c0_i32_1 = arith.constant 0 : i32
    return %c0_i32, %c0_i32_0 : i32, i32
  }
  func.func @transform_3(%arg0: i32, %arg1: i32) -> (i32, i32) {
    %c0_i32 = arith.constant 0 : i32
    %c0_i32_0 = arith.constant 0 : i32
    %c0_i32_1 = arith.constant 0 : i32
    return %c0_i32, %c0_i32_0 : i32, i32
  }
  func.func @transform_4(%arg0: i32, %arg1: i32) -> (i32, i32) {
    %c0_i32 = arith.constant 0 : i32
    %c0_i32_0 = arith.constant 0 : i32
    return %arg0, %c0_i32 : i32, i32
  }
}

module attributes {stable_mosaic.version = 11 : i64} {
  func.func @_dense_kernel(%arg0: i32, %arg1: memref<128x8xf32, #tpu.memory_space<vmem>>, %arg2: memref<8x128xf32, #tpu.memory_space<vmem>>, %arg3: memref<128x128xf32, #tpu.memory_space<vmem>>) attributes {dimension_semantics = [#tpu.dimension_semantics<parallel>], iteration_bounds = array<i64: 1>, scalar_prefetch = 0 : i64, scratch_operands = 0 : i64, tpu.core_type = #tpu.core_type<tc>, window_params = [{transform_indices = @transform_0, window_bounds = array<i64: 128, 8>}, {pipeline_mode = #tpu.pipeline_mode<synchronous>, transform_indices = @transform_1, window_bounds = array<i64: 8, 128>}, {transform_indices = @transform_2, window_bounds = array<i64: 128, 128>}]} {
    %c0 = arith.constant 0 : index
    %c0_0 = arith.constant 0 : index
    %0 = vector.load %arg1[%c0, %c0_0] : memref<128x8xf32, #tpu.memory_space<vmem>>, vector<128x8xf32>
    %c0_1 = arith.constant 0 : index
    %c0_2 = arith.constant 0 : index
    %1 = vector.load %arg2[%c0_1, %c0_2] : memref<8x128xf32, #tpu.memory_space<vmem>>, vector<8x128xf32>
    %cst = arith.constant dense<0.000000e+00> : vector<128x128xf32>
    %2 = tpu.matmul %0, %1, %cst {dimension_numbers = #tpu.dot_dimension_numbers<[1], [0], [0], [1], [0, 0, 1, 1], [], []>} : vector<128x8xf32>, vector<8x128xf32>, vector<128x128xf32> -> vector<128x128xf32>
    %c0_3 = arith.constant 0 : index
    %c0_4 = arith.constant 0 : index
    %3 = vector.load %arg3[%c0_3, %c0_4] : memref<128x128xf32, #tpu.memory_space<vmem>>, vector<128x128xf32>
    tpu.vector_store %arg3[%c0_3, %c0_4], %2 {strides = array<i32>} : memref<128x128xf32, #tpu.memory_space<vmem>>, vector<128x128xf32>,
    return
  }
  func.func @transform_0(%arg0: i32) -> (i32, i32) {
    %c0_i32 = arith.constant 0 : i32
    %c0_i32_0 = arith.constant 0 : i32
    return %arg0, %c0_i32 : i32, i32
  }
  func.func @transform_1(%arg0: i32) -> (i32, i32) {
    %c0_i32 = arith.constant 0 : i32
    %c0_i32_0 = arith.constant 0 : i32
    %c0_i32_1 = arith.constant 0 : i32
    return %c0_i32, %c0_i32_0 : i32, i32
  }
  func.func @transform_2(%arg0: i32) -> (i32, i32) {
    %c0_i32 = arith.constant 0 : i32
    %c0_i32_0 = arith.constant 0 : i32
    return %arg0, %c0_i32 : i32, i32
  }
}

module attributes {stable_mosaic.version = 11 : i64} {
  func.func @_graph_conv_kernel(%arg0: i32, %arg1: i32, %arg2: memref<128x128xf32, #tpu.memory_space<vmem>>, %arg3: memref<128x128xf32, #tpu.memory_space<vmem>>, %arg4: memref<1x128xf32, #tpu.memory_space<vmem>>, %arg5: memref<128x128xf32, #tpu.memory_space<vmem>>, %arg6: memref<128x128xf32, #tpu.memory_space<vmem>>) attributes {dimension_semantics = [#tpu.dimension_semantics<parallel>, #tpu.dimension_semantics<arbitrary>], iteration_bounds = array<i64: 1, 1>, scalar_prefetch = 0 : i64, scratch_operands = 1 : i64, tpu.core_type = #tpu.core_type<tc>, window_params = [{transform_indices = @transform_0, window_bounds = array<i64: 128, 128>}, {transform_indices = @transform_1, window_bounds = array<i64: 128, 128>}, {pipeline_mode = #tpu.pipeline_mode<synchronous>, transform_indices = @transform_2, window_bounds = array<i64: 1, 128>}, {transform_indices = @transform_3, window_bounds = array<i64: 128, 128>}]} {
    %c0_i32 = arith.constant 0 : i32
    %0 = arith.cmpi eq, %arg1, %c0_i32 : i32
    %1 = arith.extui %0 : i1 to i32
    %c0_i32_0 = arith.constant 0 : i32
    %2 = arith.cmpi ne, %1, %c0_i32_0 : i32
    scf.if %2 {
      %cst_10 = arith.constant 0.000000e+00 : f32
      %12 = vector.broadcast %cst_10 : f32 to vector<128x128xf32>
      %c0_11 = arith.constant 0 : index
      %c0_12 = arith.constant 0 : index
      %13 = vector.load %arg6[%c0_11, %c0_12] : memref<128x128xf32, #tpu.memory_space<vmem>>, vector<128x128xf32>
      tpu.vector_store %arg6[%c0_11, %c0_12], %12 {strides = array<i32>} : memref<128x128xf32, #tpu.memory_space<vmem>>, vector<128x128xf32>,
    } else {
    }
    %c0 = arith.constant 0 : index
    %c0_1 = arith.constant 0 : index
    %3 = vector.load %arg6[%c0, %c0_1] : memref<128x128xf32, #tpu.memory_space<vmem>>, vector<128x128xf32>
    %c0_2 = arith.constant 0 : index
    %c0_3 = arith.constant 0 : index
    %4 = vector.load %arg2[%c0_2, %c0_3] : memref<128x128xf32, #tpu.memory_space<vmem>>, vector<128x128xf32>
    %c0_4 = arith.constant 0 : index
    %c0_5 = arith.constant 0 : index
    %5 = vector.load %arg3[%c0_4, %c0_5] : memref<128x128xf32, #tpu.memory_space<vmem>>, vector<128x128xf32>
    %cst = arith.constant dense<0.000000e+00> : vector<128x128xf32>
    %6 = tpu.matmul %4, %5, %cst {dimension_numbers = #tpu.dot_dimension_numbers<[1], [0], [0], [1], [0, 0, 1, 1], [], []>} : vector<128x128xf32>, vector<128x128xf32>, vector<128x128xf32> -> vector<128x128xf32>
    %7 = arith.addf %3, %6 : vector<128x128xf32>
    %c0_6 = arith.constant 0 : index
    %c0_7 = arith.constant 0 : index
    %8 = vector.load %arg6[%c0_6, %c0_7] : memref<128x128xf32, #tpu.memory_space<vmem>>, vector<128x128xf32>
    tpu.vector_store %arg6[%c0_6, %c0_7], %7 {strides = array<i32>} : memref<128x128xf32, #tpu.memory_space<vmem>>, vector<128x128xf32>,
    %c0_i32_8 = arith.constant 0 : i32
    %9 = arith.cmpi eq, %arg1, %c0_i32_8 : i32
    %10 = arith.extui %9 : i1 to i32
    %c0_i32_9 = arith.constant 0 : i32
    %11 = arith.cmpi ne, %10, %c0_i32_9 : i32
    scf.if %11 {
      %c0_10 = arith.constant 0 : index
      %c0_11 = arith.constant 0 : index
      %12 = vector.load %arg6[%c0_10, %c0_11] : memref<128x128xf32, #tpu.memory_space<vmem>>, vector<128x128xf32>
      %c0_12 = arith.constant 0 : index
      %c0_13 = arith.constant 0 : index
      %13 = vector.load %arg4[%c0_12, %c0_13] : memref<1x128xf32, #tpu.memory_space<vmem>>, vector<1x128xf32>
      %14 = vector.broadcast %13 : vector<1x128xf32> to vector<128x128xf32>
      %15 = arith.addf %12, %14 : vector<128x128xf32>
      %c0_14 = arith.constant 0 : index
      %c0_15 = arith.constant 0 : index
      %16 = vector.load %arg5[%c0_14, %c0_15] : memref<128x128xf32, #tpu.memory_space<vmem>>, vector<128x128xf32>
      tpu.vector_store %arg5[%c0_14, %c0_15], %15 {strides = array<i32>} : memref<128x128xf32, #tpu.memory_space<vmem>>, vector<128x128xf32>,
    } else {
    }
    return
  }
  func.func @transform_0(%arg0: i32, %arg1: i32) -> (i32, i32) {
    %c0_i32 = arith.constant 0 : i32
    return %arg0, %arg1 : i32, i32
  }
  func.func @transform_1(%arg0: i32, %arg1: i32) -> (i32, i32) {
    %c0_i32 = arith.constant 0 : i32
    %c0_i32_0 = arith.constant 0 : i32
    return %arg1, %c0_i32 : i32, i32
  }
  func.func @transform_2(%arg0: i32, %arg1: i32) -> (i32, i32) {
    %c0_i32 = arith.constant 0 : i32
    %c0_i32_0 = arith.constant 0 : i32
    %c0_i32_1 = arith.constant 0 : i32
    return %c0_i32, %c0_i32_0 : i32, i32
  }
  func.func @transform_3(%arg0: i32, %arg1: i32) -> (i32, i32) {
    %c0_i32 = arith.constant 0 : i32
    %c0_i32_0 = arith.constant 0 : i32
    return %arg0, %c0_i32 : i32, i32
  }
}

</mosaic_0001>

<bundles_post_ra>
// kernel: gcn_forward.3
= control target key start
LH: loop header
LB: loop body
LE: loop exit
PB: predicated region body
PF: predicated region fallthrough
CT: control target
= control target key end

     0   :  { %vm28_vm0 = vcmask 64512   ;;  %s433_s1 = inlined_call_operand.vmem [shape: f32[8,128], index: 1, kind: input, shape index: {}]   ;;  %s434_s0 = inlined_call_operand.vmem [shape: f32[128,8], index: 0, kind: input, shape index: {}]   ;;  %s435_s2 = inlined_call_operand.vmem [shape: f32[128,128], index: 2, kind: output, shape index: {}]  }
   0x1   :  { %v27_v0 = vld [vmem:[%s433_s1] sm:$0xff]  ;;  %v12_v3 = vld [vmem:[%s434_s0 + $0x8] sm:$0xff]  ;;  %v13_v5 = vld [vmem:[%s434_s0 + $0x10] sm:$0xff] }
   0x2   :  { %v11_v1 = vld [vmem:[%s434_s0] sm:$0xff]  ;;  %275 = vmatprep.subr.mxu0 %v27_v0  ;;  %301 = vmatprep.subr.mxu1 %v27_v0  ;;  %v20_v4 = vld [vmem:[%s434_s0 + $0x48] sm:$0xff]  ;;  %v21_v6 = vld [vmem:[%s434_s0 + $0x50] sm:$0xff] }
   0x3   :  { %v19_v2 = vld [vmem:[%s434_s0 + $0x40] sm:$0xff]  ;;  %276 = vmatpush3.msra.mxu0 %v27_v0  ;;  %302 = vmatpush3.msra.mxu1 %v27_v0  ;;  %v14_v7 = vld [vmem:[%s434_s0 + $0x18] sm:$0xff]  ;;  %v16_v11 = vld [vmem:[%s434_s0 + $0x28] sm:$0xff] }
   0x4   :  { %277 = vmatprep.mubr.msk.f32.mxu0 %vm28_vm0, %v11_v1  ;;  %289 = vmatprep.mubr.msk.f32.mxu1 %vm28_vm0, %v19_v2  ;;  %v22_v8 = vld [vmem:[%s434_s0 + $0x58] sm:$0xff]  ;;  %v15_v9 = vld [vmem:[%s434_s0 + $0x20] sm:$0xff]  ;;  %v24_v12 = vld [vmem:[%s434_s0 + $0x68] sm:$0xff] }
   0x5   :  { %278 = vmatmul.mubr.msk.f32.vlgmr.msra.gmra.mxu0 %vm28_vm0, %v12_v3  ;;  %290 = vmatmul.mubr.msk.f32.vlgmr.msra.gmra.mxu1 %vm28_vm0, %v20_v4  ;;  %v23_v10 = vld [vmem:[%s434_s0 + $0x60] sm:$0xff]  ;;  %v17_v13 = vld [vmem:[%s434_s0 + $0x30] sm:$0xff]  ;;  %v18_v15 = vld [vmem:[%s434_s0 + $0x38] sm:$0xff] }
   0x6   :  { %280 = vmatprep.mubr.msk.f32.mxu0 %vm28_vm0, %v13_v5  ;;  %292 = vmatprep.mubr.msk.f32.mxu1 %vm28_vm0, %v21_v6  ;;  %v25_v14 = vld [vmem:[%s434_s0 + $0x70] sm:$0xff]  ;;  %v26_v16 = vld [vmem:[%s434_s0 + $0x78] sm:$0xff] }
   0x9   :  { %281 = vmatmul.mubr.msk.f32.gmra.mxu0 %vm28_vm0, %v14_v7  ;;  %293 = vmatmul.mubr.msk.f32.gmra.mxu1 %vm28_vm0, %v22_v8 }
   0xa   :  { %283 = vmatprep.mubr.msk.f32.mxu0 %vm28_vm0, %v15_v9  ;;  %295 = vmatprep.mubr.msk.f32.mxu1 %vm28_vm0, %v23_v10 }
   0xd   :  { %284 = vmatmul.mubr.msk.f32.gmra.mxu0 %vm28_vm0, %v16_v11  ;;  %296 = vmatmul.mubr.msk.f32.gmra.mxu1 %vm28_vm0, %v24_v12 }
   0xe   :  { %286 = vmatprep.mubr.msk.f32.mxu0 %vm28_vm0, %v17_v13  ;;  %298 = vmatprep.mubr.msk.f32.mxu1 %vm28_vm0, %v25_v14 }
  0x11   :  { %287 = vmatmul.mubr.msk.f32.gmra.mxu0 %vm28_vm0, %v18_v15  ;;  %299 = vmatmul.mubr.msk.f32.gmra.mxu1 %vm28_vm0, %v26_v16 }
  0xc5   :  { %v279_v17 = vpop.f32.mrf.mxu0  ;;  %v291_v18 = vpop.f32.mrf.mxu1 }
  0xc6   :  { %223 = vst [vmem:[%s435_s2 + $0x8] sm:$0xff] %v279_v17  ;;  %231 = vst [vmem:[%s435_s2 + $0x48] sm:$0xff] %v291_v18 }
  0xc7   :  { %v143_v19 = vpop.f32.mrf.mxu0  ;;  %v183_v20 = vpop.f32.mrf.mxu1 }
  0xc8   :  { %222 = vst [vmem:[%s435_s2] sm:$0xff] %v143_v19  ;;  %230 = vst [vmem:[%s435_s2 + $0x40] sm:$0xff] %v183_v20 }
  0xc9   :  { %v282_v21 = vpop.f32.mrf.mxu0  ;;  %v294_v22 = vpop.f32.mrf.mxu1 }
  0xca   :  { %225 = vst [vmem:[%s435_s2 + $0x18] sm:$0xff] %v282_v21  ;;  %233 = vst [vmem:[%s435_s2 + $0x58] sm:$0xff] %v294_v22 }
  0xcb   :  { %v153_v23 = vpop.f32.mrf.mxu0  ;;  %v193_v24 = vpop.f32.mrf.mxu1 }
  0xcc   :  { %224 = vst [vmem:[%s435_s2 + $0x10] sm:$0xff] %v153_v23  ;;  %232 = vst [vmem:[%s435_s2 + $0x50] sm:$0xff] %v193_v24 }
  0xcd   :  { %v285_v25 = vpop.f32.mrf.mxu0  ;;  %v297_v26 = vpop.f32.mrf.mxu1 }
  0xce   :  { %227 = vst [vmem:[%s435_s2 + $0x28] sm:$0xff] %v285_v25  ;;  %235 = vst [vmem:[%s435_s2 + $0x68] sm:$0xff] %v297_v26 }
  0xcf   :  { %v163_v27 = vpop.f32.mrf.mxu0  ;;  %v203_v28 = vpop.f32.mrf.mxu1 }
  0xd0   :  { %226 = vst [vmem:[%s435_s2 + $0x20] sm:$0xff] %v163_v27  ;;  %234 = vst [vmem:[%s435_s2 + $0x60] sm:$0xff] %v203_v28 }
  0xd1   :  { %v288_v29 = vpop.f32.mrf.mxu0  ;;  %v300_v30 = vpop.f32.mrf.mxu1 }
  0xd2   :  { %229 = vst [vmem:[%s435_s2 + $0x38] sm:$0xff] %v288_v29  ;;  %237 = vst [vmem:[%s435_s2 + $0x78] sm:$0xff] %v300_v30 }
  0xd3   :  { %v173_v31 = vpop.f32.mrf.mxu0  ;;  %v213_v32 = vpop.f32.mrf.mxu1 }
  0xd4   :  { %228 = vst [vmem:[%s435_s2 + $0x30] sm:$0xff] %v173_v31  ;;  %236 = vst [vmem:[%s435_s2 + $0x70] sm:$0xff] %v213_v32 }

// kernel: gcn_forward.5
= control target key start
LH: loop header
LB: loop body
LE: loop exit
PB: predicated region body
PF: predicated region fallthrough
CT: control target
= control target key end

     0   :  { %s609_s1 = inlined_call_operand.vmem [shape: f32[128,128], index: 1, kind: input, shape index: {}]   ;;  %s610_s0 = inlined_call_operand.vmem [shape: f32[128,128], index: 0, kind: input, shape index: {}]   ;;  %s611_s2 = inlined_call_operand.vmem [shape: f32[1,128], index: 2, kind: input, shape index: {}]   ;;  %s612_s3 = inlined_call_operand.vmem [shape: f32[128,128], index: 3, kind: output, shape index: {}]  }
   0x1   :  { %v81_v0 = vld [vmem:[%s609_s1 + $0x78] sm:$0xff]  ;;  %v80_v1 = vld [vmem:[%s609_s1 + $0x70] sm:$0xff]  ;;  %v79_v2 = vld [vmem:[%s609_s1 + $0x68] sm:$0xff] }
   0x2   :  { %354 = vmatprep.subr.mxu0 %v81_v0  ;;  %410 = vmatprep.subr.mxu1 %v81_v0  ;;  %v78_v3 = vld [vmem:[%s609_s1 + $0x60] sm:$0xff]  ;;  %v77_v4 = vld [vmem:[%s609_s1 + $0x58] sm:$0xff]  ;;  %v76_v5 = vld [vmem:[%s609_s1 + $0x50] sm:$0xff] }
   0x3   :  { %355 = vmatpush3.msra.mxu0 %v81_v0  ;;  %426 = vmatpush3.msra.mxu1 %v81_v0  ;;  %v75_v6 = vld [vmem:[%s609_s1 + $0x48] sm:$0xff]  ;;  %v74_v7 = vld [vmem:[%s609_s1 + $0x40] sm:$0xff]  ;;  %v73_v8 = vld [vmem:[%s609_s1 + $0x38] sm:$0xff] }
   0x4   :  { %356 = vmatprep.subr.mxu0 %v80_v1  ;;  %411 = vmatprep.subr.mxu1 %v80_v1  ;;  %v72_v9 = vld [vmem:[%s609_s1 + $0x30] sm:$0xff]  ;;  %v71_v10 = vld [vmem:[%s609_s1 + $0x28] sm:$0xff]  ;;  %v70_v11 = vld [vmem:[%s609_s1 + $0x20] sm:$0xff] }
   0x5   :  { %357 = vmatpush3.msra.mxu0 %v80_v1  ;;  %427 = vmatpush3.msra.mxu1 %v80_v1  ;;  %v69_v12 = vld [vmem:[%s609_s1 + $0x18] sm:$0xff]  ;;  %v68_v13 = vld [vmem:[%s609_s1 + $0x10] sm:$0xff]  ;;  %v67_v14 = vld [vmem:[%s609_s1 + $0x8] sm:$0xff] }
   0x6   :  { %358 = vmatprep.subr.mxu0 %v79_v2  ;;  %412 = vmatprep.subr.mxu1 %v79_v2  ;;  %v66_v15 = vld [vmem:[%s609_s1] sm:$0xff]  ;;  %v51_v18 = vld [vmem:[%s610_s0 + $0x8] sm:$0xff]  ;;  %v52_v20 = vld [vmem:[%s610_s0 + $0x10] sm:$0xff] }
   0x7   :  { %359 = vmatpush3.msra.mxu0 %v79_v2  ;;  %428 = vmatpush3.msra.mxu1 %v79_v2  ;;  %v50_v16 = vld [vmem:[%s610_s0] sm:$0xff]  ;;  %v59_v19 = vld [vmem:[%s610_s0 + $0x48] sm:$0xff]  ;;  %v60_v21 = vld [vmem:[%s610_s0 + $0x50] sm:$0xff] }
   0x8   :  { %360 = vmatprep.subr.mxu0 %v78_v3  ;;  %413 = vmatprep.subr.mxu1 %v78_v3  ;;  %v58_v17 = vld [vmem:[%s610_s0 + $0x40] sm:$0xff]  ;;  %v53_v22 = vld [vmem:[%s610_s0 + $0x18] sm:$0xff]  ;;  %v55_v26 = vld [vmem:[%s610_s0 + $0x28] sm:$0xff] }
   0x9   :  { %361 = vmatpush3.msra.mxu0 %v78_v3  ;;  %429 = vmatpush3.msra.mxu1 %v78_v3  ;;  %v61_v23 = vld [vmem:[%s610_s0 + $0x58] sm:$0xff]  ;;  %v54_v24 = vld [vmem:[%s610_s0 + $0x20] sm:$0xff]  ;;  %v63_v27 = vld [vmem:[%s610_s0 + $0x68] sm:$0xff] }
   0xa   :  { %362 = vmatprep.subr.mxu0 %v77_v4  ;;  %414 = vmatprep.subr.mxu1 %v77_v4  ;;  %v62_v25 = vld [vmem:[%s610_s0 + $0x60] sm:$0xff]  ;;  %v56_v28 = vld [vmem:[%s610_s0 + $0x30] sm:$0xff]  ;;  %v57_v30 = vld [vmem:[%s610_s0 + $0x38] sm:$0xff] }
   0xb   :  { %363 = vmatpush3.msra.mxu0 %v77_v4  ;;  %430 = vmatpush3.msra.mxu1 %v77_v4  ;;  %v64_v29 = vld [vmem:[%s610_s0 + $0x70] sm:$0xff]  ;;  %v65_v31 = vld [vmem:[%s610_s0 + $0x78] sm:$0xff]  ;;  %v321_v32 = vld [vmem:[%s611_s2] ss:$0 sm:$0xff] }
   0xc   :  { %364 = vmatprep.subr.mxu0 %v76_v5  ;;  %415 = vmatprep.subr.mxu1 %v76_v5 }
   0xd   :  { %365 = vmatpush3.msra.mxu0 %v76_v5  ;;  %431 = vmatpush3.msra.mxu1 %v76_v5 }
   0xe   :  { %366 = vmatprep.subr.mxu0 %v75_v6  ;;  %416 = vmatprep.subr.mxu1 %v75_v6 }
   0xf   :  { %367 = vmatpush3.msra.mxu0 %v75_v6  ;;  %432 = vmatpush3.msra.mxu1 %v75_v6 }
  0x10   :  { %368 = vmatprep.subr.mxu0 %v74_v7  ;;  %417 = vmatprep.subr.mxu1 %v74_v7 }
  0x11   :  { %369 = vmatpush3.msra.mxu0 %v74_v7  ;;  %433 = vmatpush3.msra.mxu1 %v74_v7 }
  0x12   :  { %370 = vmatprep.subr.mxu0 %v73_v8  ;;  %418 = vmatprep.subr.mxu1 %v73_v8 }
  0x13   :  { %371 = vmatpush3.msra.mxu0 %v73_v8  ;;  %434 = vmatpush3.msra.mxu1 %v73_v8 }
  0x14   :  { %372 = vmatprep.subr.mxu0 %v72_v9  ;;  %419 = vmatprep.subr.mxu1 %v72_v9 }
  0x15   :  { %373 = vmatpush3.msra.mxu0 %v72_v9  ;;  %435 = vmatpush3.msra.mxu1 %v72_v9 }
  0x16   :  { %374 = vmatprep.subr.mxu0 %v71_v10  ;;  %420 = vmatprep.subr.mxu1 %v71_v10 }
  0x17   :  { %375 = vmatpush3.msra.mxu0 %v71_v10  ;;  %436 = vmatpush3.msra.mxu1 %v71_v10 }
  0x18   :  { %376 = vmatprep.subr.mxu0 %v70_v11  ;;  %421 = vmatprep.subr.mxu1 %v70_v11 }
  0x19   :  { %377 = vmatpush3.msra.mxu0 %v70_v11  ;;  %437 = vmatpush3.msra.mxu1 %v70_v11 }
  0x1a   :  { %378 = vmatprep.subr.mxu0 %v69_v12  ;;  %422 = vmatprep.subr.mxu1 %v69_v12 }
  0x1b   :  { %379 = vmatpush3.msra.mxu0 %v69_v12  ;;  %438 = vmatpush3.msra.mxu1 %v69_v12 }
  0x1c   :  { %380 = vmatprep.subr.mxu0 %v68_v13  ;;  %423 = vmatprep.subr.mxu1 %v68_v13 }
  0x1d   :  { %381 = vmatpush3.msra.mxu0 %v68_v13  ;;  %439 = vmatpush3.msra.mxu1 %v68_v13 }
  0x1e   :  { %382 = vmatprep.subr.mxu0 %v67_v14  ;;  %424 = vmatprep.subr.mxu1 %v67_v14 }
  0x1f   :  { %383 = vmatpush3.msra.mxu0 %v67_v14  ;;  %440 = vmatpush3.msra.mxu1 %v67_v14 }
  0x20   :  { %384 = vmatprep.subr.mxu0 %v66_v15  ;;  %425 = vmatprep.subr.mxu1 %v66_v15 }
  0x21   :  { %385 = vmatpush3.msra.mxu0 %v66_v15  ;;  %441 = vmatpush3.msra.mxu1 %v66_v15 }
  0x22   :  { %386 = vmatprep.mubr.f32.mxu0 %v50_v16  ;;  %398 = vmatprep.mubr.f32.mxu1 %v58_v17 }
  0x23   :  { %387 = vmatmul.mubr.f32.vlgmr.msra.gmra.mxu0 %v51_v18  ;;  %399 = vmatmul.mubr.f32.vlgmr.msra.gmra.mxu1 %v59_v19 }
  0x24   :  { %389 = vmatprep.mubr.f32.mxu0 %v52_v20  ;;  %401 = vmatprep.mubr.f32.mxu1 %v60_v21 }
  0x27   :  { %390 = vmatmul.mubr.f32.gmra.mxu0 %v53_v22  ;;  %402 = vmatmul.mubr.f32.gmra.mxu1 %v61_v23 }
  0x28   :  { %392 = vmatprep.mubr.f32.mxu0 %v54_v24  ;;  %404 = vmatprep.mubr.f32.mxu1 %v62_v25 }
  0x2b   :  { %393 = vmatmul.mubr.f32.gmra.mxu0 %v55_v26  ;;  %405 = vmatmul.mubr.f32.gmra.mxu1 %v63_v27 }
  0x2c   :  { %395 = vmatprep.mubr.f32.mxu0 %v56_v28  ;;  %407 = vmatprep.mubr.f32.mxu1 %v64_v29 }
  0x2f   :  { %396 = vmatmul.mubr.f32.gmra.mxu0 %v57_v30  ;;  %408 = vmatmul.mubr.f32.gmra.mxu1 %v65_v31 }
  0xe3   :  { %v388_v33 = vpop.f32.mrf.mxu0  ;;  %v400_v34 = vpop.f32.mrf.mxu1 }
  0xe4   :  { %v286_v35 = vadd.f32 %v388_v33, %v321_v32  ;;  %v294_v36 = vadd.f32 %v400_v34, %v321_v32 }
  0xe5   :  { %v148_v37 = vpop.f32.mrf.mxu0  ;;  %v188_v38 = vpop.f32.mrf.mxu1 }
  0xe6   :  { %302 = vst [vmem:[%s612_s3 + $0x8] sm:$0xff] %v286_v35  ;;  %310 = vst [vmem:[%s612_s3 + $0x48] sm:$0xff] %v294_v36  ;;  %v285_v39 = vadd.f32 %v321_v32, %v148_v37  ;;  %v293_v40 = vadd.f32 %v321_v32, %v188_v38 }
  0xe7   :  { %v391_v41 = vpop.f32.mrf.mxu0  ;;  %v403_v42 = vpop.f32.mrf.mxu1 }
  0xe8   :  { %301 = vst [vmem:[%s612_s3] sm:$0xff] %v285_v39  ;;  %309 = vst [vmem:[%s612_s3 + $0x40] sm:$0xff] %v293_v40  ;;  %v288_v43 = vadd.f32 %v391_v41, %v321_v32  ;;  %v296_v44 = vadd.f32 %v403_v42, %v321_v32 }
  0xe9   :  { %v158_v45 = vpop.f32.mrf.mxu0  ;;  %v198_v46 = vpop.f32.mrf.mxu1 }
  0xea   :  { %304 = vst [vmem:[%s612_s3 + $0x18] sm:$0xff] %v288_v43  ;;  %312 = vst [vmem:[%s612_s3 + $0x58] sm:$0xff] %v296_v44  ;;  %v287_v47 = vadd.f32 %v321_v32, %v158_v45  ;;  %v295_v48 = vadd.f32 %v321_v32, %v198_v46 }
  0xeb   :  { %v394_v49 = vpop.f32.mrf.mxu0  ;;  %v406_v50 = vpop.f32.mrf.mxu1 }
  0xec   :  { %303 = vst [vmem:[%s612_s3 + $0x10] sm:$0xff] %v287_v47  ;;  %311 = vst [vmem:[%s612_s3 + $0x50] sm:$0xff] %v295_v48  ;;  %v290_v51 = vadd.f32 %v394_v49, %v321_v32  ;;  %v298_v52 = vadd.f32 %v406_v50, %v321_v32 }
  0xed   :  { %v168_v53 = vpop.f32.mrf.mxu0  ;;  %v208_v54 = vpop.f32.mrf.mxu1 }
  0xee   :  { %306 = vst [vmem:[%s612_s3 + $0x28] sm:$0xff] %v290_v51  ;;  %314 = vst [vmem:[%s612_s3 + $0x68] sm:$0xff] %v298_v52  ;;  %v289_v55 = vadd.f32 %v321_v32, %v168_v53  ;;  %v297_v56 = vadd.f32 %v321_v32, %v208_v54 }
  0xef   :  { %v397_v57 = vpop.f32.mrf.mxu0  ;;  %v409_v58 = vpop.f32.mrf.mxu1 }
  0xf0   :  { %305 = vst [vmem:[%s612_s3 + $0x20] sm:$0xff] %v289_v55  ;;  %313 = vst [vmem:[%s612_s3 + $0x60] sm:$0xff] %v297_v56  ;;  %v292_v59 = vadd.f32 %v397_v57, %v321_v32  ;;  %v300_v60 = vadd.f32 %v409_v58, %v321_v32 }
  0xf1   :  { %v178_v61 = vpop.f32.mrf.mxu0  ;;  %v218_v62 = vpop.f32.mrf.mxu1 }
  0xf2   :  { %308 = vst [vmem:[%s612_s3 + $0x38] sm:$0xff] %v292_v59  ;;  %316 = vst [vmem:[%s612_s3 + $0x78] sm:$0xff] %v300_v60  ;;  %v291_v63 = vadd.f32 %v321_v32, %v178_v61  ;;  %v299_v0 = vadd.f32 %v321_v32, %v218_v62 }
  0xf4   :  { %307 = vst [vmem:[%s612_s3 + $0x30] sm:$0xff] %v291_v63  ;;  %315 = vst [vmem:[%s612_s3 + $0x70] sm:$0xff] %v299_v0 }

// kernel: gcn_forward.4
= control target key start
LH: loop header
LB: loop body
LE: loop exit
PB: predicated region body
PF: predicated region fallthrough
CT: control target
= control target key end

     0   :  { %s898_s1 = inlined_call_operand.vmem [shape: f32[128,128], index: 1, kind: input, shape index: {}]   ;;  %s899_s0 = inlined_call_operand.vmem [shape: f32[128,128], index: 0, kind: input, shape index: {}]   ;;  %s900_s3 = inlined_call_operand.vmem [shape: f32[128,128], index: 3, kind: input, shape index: {}]   ;;  %s901_s2 = inlined_call_operand.vmem [shape: f32[1,128], index: 2, kind: input, shape index: {}]   ;;  %s902_s4 = inlined_call_operand.vmem [shape: f32[128,128], index: 4, kind: output, shape index: {}]  }
   0x1   :  { %v84_v0 = vld [vmem:[%s898_s1 + $0x78] sm:$0xff]  ;;  %v83_v1 = vld [vmem:[%s898_s1 + $0x70] sm:$0xff]  ;;  %v82_v2 = vld [vmem:[%s898_s1 + $0x68] sm:$0xff] }
   0x2   :  { %566 = vmatprep.subr.mxu0 %v84_v0  ;;  %v81_v3 = vld [vmem:[%s898_s1 + $0x60] sm:$0xff]  ;;  %v80_v5 = vld [vmem:[%s898_s1 + $0x58] sm:$0xff]  ;;  %v79_v6 = vld [vmem:[%s898_s1 + $0x50] sm:$0xff] }
   0x3   :  { %567 = vmatpush3.msra.mxu0 %v84_v0  ;;  %v53_v4 = vld [vmem:[%s899_s0] sm:$0xff]  ;;  %v78_v7 = vld [vmem:[%s898_s1 + $0x48] sm:$0xff]  ;;  %v335_v8 = vld [vmem:[%s900_s3 + $0x78] sm:$0xff] }
   0x4   :  { %568 = vmatprep.subr.mxu0 %v83_v1  ;;  %598 = vmatprep.mubr.f32.mxu0 %v53_v4  ;;  %v334_v9 = vld [vmem:[%s900_s3 + $0x70] sm:$0xff]  ;;  %v77_v10 = vld [vmem:[%s898_s1 + $0x40] sm:$0xff]  ;;  %v333_v11 = vld [vmem:[%s900_s3 + $0x68] sm:$0xff] }
   0x5   :  { %569 = vmatpush3.msra.mxu0 %v83_v1  ;;  %622 = vmatprep.subr.mxu1 %v335_v8  ;;  %v76_v12 = vld [vmem:[%s898_s1 + $0x38] sm:$0xff]  ;;  %v332_v13 = vld [vmem:[%s900_s3 + $0x60] sm:$0xff]  ;;  %v75_v14 = vld [vmem:[%s898_s1 + $0x30] sm:$0xff] }
   0x6   :  { %570 = vmatprep.subr.mxu0 %v82_v2  ;;  %623 = vmatpush3.msra.mxu1 %v335_v8  ;;  %v331_v15 = vld [vmem:[%s900_s3 + $0x58] sm:$0xff]  ;;  %v74_v16 = vld [vmem:[%s898_s1 + $0x28] sm:$0xff]  ;;  %v330_v17 = vld [vmem:[%s900_s3 + $0x50] sm:$0xff] }
   0x7   :  { %571 = vmatpush3.msra.mxu0 %v82_v2  ;;  %624 = vmatprep.subr.mxu1 %v334_v9  ;;  %v73_v18 = vld [vmem:[%s898_s1 + $0x20] sm:$0xff]  ;;  %v329_v19 = vld [vmem:[%s900_s3 + $0x48] sm:$0xff]  ;;  %v72_v20 = vld [vmem:[%s898_s1 + $0x18] sm:$0xff] }
   0x8   :  { %572 = vmatprep.subr.mxu0 %v81_v3  ;;  %625 = vmatpush3.msra.mxu1 %v334_v9  ;;  %v328_v21 = vld [vmem:[%s900_s3 + $0x40] sm:$0xff]  ;;  %v71_v22 = vld [vmem:[%s898_s1 + $0x10] sm:$0xff]  ;;  %v327_v23 = vld [vmem:[%s900_s3 + $0x38] sm:$0xff] }
   0x9   :  { %573 = vmatpush3.msra.mxu0 %v81_v3  ;;  %626 = vmatprep.subr.mxu1 %v333_v11  ;;  %v70_v24 = vld [vmem:[%s898_s1 + $0x8] sm:$0xff]  ;;  %v326_v25 = vld [vmem:[%s900_s3 + $0x30] sm:$0xff]  ;;  %v69_v26 = vld [vmem:[%s898_s1] sm:$0xff] }
   0xa   :  { %574 = vmatprep.subr.mxu0 %v80_v5  ;;  %627 = vmatpush3.msra.mxu1 %v333_v11  ;;  %v325_v27 = vld [vmem:[%s900_s3 + $0x28] sm:$0xff]  ;;  %v324_v29 = vld [vmem:[%s900_s3 + $0x20] sm:$0xff]  ;;  %v55_v30 = vld [vmem:[%s899_s0 + $0x10] sm:$0xff] }
   0xb   :  { %575 = vmatpush3.msra.mxu0 %v80_v5  ;;  %628 = vmatprep.subr.mxu1 %v332_v13  ;;  %v54_v28 = vld [vmem:[%s899_s0 + $0x8] sm:$0xff]  ;;  %v56_v31 = vld [vmem:[%s899_s0 + $0x18] sm:$0xff]  ;;  %v57_v32 = vld [vmem:[%s899_s0 + $0x20] sm:$0xff] }
   0xc   :  { %576 = vmatprep.subr.mxu0 %v79_v6  ;;  %629 = vmatpush3.msra.mxu1 %v332_v13  ;;  %v58_v33 = vld [vmem:[%s899_s0 + $0x28] sm:$0xff]  ;;  %v59_v34 = vld [vmem:[%s899_s0 + $0x30] sm:$0xff]  ;;  %v60_v35 = vld [vmem:[%s899_s0 + $0x38] sm:$0xff] }
   0xd   :  { %577 = vmatpush3.msra.mxu0 %v79_v6  ;;  %630 = vmatprep.subr.mxu1 %v331_v15  ;;  %v61_v36 = vld [vmem:[%s899_s0 + $0x40] sm:$0xff]  ;;  %v62_v37 = vld [vmem:[%s899_s0 + $0x48] sm:$0xff]  ;;  %v63_v38 = vld [vmem:[%s899_s0 + $0x50] sm:$0xff] }
   0xe   :  { %578 = vmatprep.subr.mxu0 %v78_v7  ;;  %631 = vmatpush3.msra.mxu1 %v331_v15  ;;  %v64_v39 = vld [vmem:[%s899_s0 + $0x58] sm:$0xff]  ;;  %v65_v40 = vld [vmem:[%s899_s0 + $0x60] sm:$0xff]  ;;  %v66_v41 = vld [vmem:[%s899_s0 + $0x68] sm:$0xff] }
   0xf   :  { %579 = vmatpush3.msra.mxu0 %v78_v7  ;;  %632 = vmatprep.subr.mxu1 %v330_v17  ;;  %v67_v42 = vld [vmem:[%s899_s0 + $0x70] sm:$0xff]  ;;  %v68_v43 = vld [vmem:[%s899_s0 + $0x78] sm:$0xff]  ;;  %v321_v46 = vld [vmem:[%s900_s3 + $0x8] sm:$0xff] }
  0x10   :  { %580 = vmatprep.subr.mxu0 %v77_v10  ;;  %633 = vmatpush3.msra.mxu1 %v330_v17  ;;  %v323_v44 = vld [vmem:[%s900_s3 + $0x18] sm:$0xff]  ;;  %v322_v45 = vld [vmem:[%s900_s3 + $0x10] sm:$0xff]  ;;  %v320_v47 = vld [vmem:[%s900_s3] sm:$0xff] }
  0x11   :  { %581 = vmatpush3.msra.mxu0 %v77_v10  ;;  %634 = vmatprep.subr.mxu1 %v329_v19  ;;  %v501_v48 = vld [vmem:[%s901_s2] ss:$0 sm:$0xff] }
  0x12   :  { %582 = vmatprep.subr.mxu0 %v76_v12  ;;  %635 = vmatpush3.msra.mxu1 %v329_v19 }
  0x13   :  { %583 = vmatpush3.msra.mxu0 %v76_v12  ;;  %636 = vmatprep.subr.mxu1 %v328_v21 }
  0x14   :  { %584 = vmatprep.subr.mxu0 %v75_v14  ;;  %637 = vmatpush3.msra.mxu1 %v328_v21 }
  0x15   :  { %585 = vmatpush3.msra.mxu0 %v75_v14  ;;  %638 = vmatprep.subr.mxu1 %v327_v23 }
  0x16   :  { %586 = vmatprep.subr.mxu0 %v74_v16  ;;  %639 = vmatpush3.msra.mxu1 %v327_v23 }
  0x17   :  { %587 = vmatpush3.msra.mxu0 %v74_v16  ;;  %640 = vmatprep.subr.mxu1 %v326_v25 }
  0x18   :  { %588 = vmatprep.subr.mxu0 %v73_v18  ;;  %641 = vmatpush3.msra.mxu1 %v326_v25 }
  0x19   :  { %589 = vmatpush3.msra.mxu0 %v73_v18  ;;  %642 = vmatprep.subr.mxu1 %v325_v27 }
  0x1a   :  { %590 = vmatprep.subr.mxu0 %v72_v20  ;;  %643 = vmatpush3.msra.mxu1 %v325_v27 }
  0x1b   :  { %591 = vmatpush3.msra.mxu0 %v72_v20  ;;  %644 = vmatprep.subr.mxu1 %v324_v29 }
  0x1c   :  { %592 = vmatprep.subr.mxu0 %v71_v22  ;;  %645 = vmatpush3.msra.mxu1 %v324_v29 }
  0x1d   :  { %593 = vmatpush3.msra.mxu0 %v71_v22  ;;  %646 = vmatprep.subr.mxu1 %v323_v44 }
  0x1e   :  { %594 = vmatprep.subr.mxu0 %v70_v24  ;;  %647 = vmatpush3.msra.mxu1 %v323_v44 }
  0x1f   :  { %595 = vmatpush3.msra.mxu0 %v70_v24  ;;  %648 = vmatprep.subr.mxu1 %v322_v45 }
  0x20   :  { %596 = vmatprep.subr.mxu0 %v69_v26  ;;  %649 = vmatpush3.msra.mxu1 %v322_v45 }
  0x21   :  { %597 = vmatpush3.msra.mxu0 %v69_v26  ;;  %650 = vmatprep.subr.mxu1 %v321_v46 }
  0x22   :  { %599 = vmatmul.mubr.f32.vlgmr.msra.gmra.mxu0 %v54_v28  ;;  %651 = vmatpush3.msra.mxu1 %v321_v46 }
  0x23   :  { %601 = vmatprep.mubr.f32.mxu0 %v55_v30  ;;  %652 = vmatprep.subr.mxu1 %v320_v47 }
  0x24   :  { %653 = vmatpush3.msra.mxu1 %v320_v47 }
  0x26   :  { %602 = vmatmul.mubr.f32.gmra.mxu0 %v56_v31 }
  0x27   :  { %604 = vmatprep.mubr.f32.mxu0 %v57_v32 }
  0x2a   :  { %605 = vmatmul.mubr.f32.gmra.mxu0 %v58_v33 }
  0x2b   :  { %607 = vmatprep.mubr.f32.mxu0 %v59_v34 }
  0x2e   :  { %608 = vmatmul.mubr.f32.gmra.mxu0 %v60_v35 }
  0x2f   :  { %610 = vmatprep.mubr.f32.mxu0 %v61_v36 }
  0x32   :  { %611 = vmatmul.mubr.f32.gmra.mxu0 %v62_v37 }
  0x33   :  { %613 = vmatprep.mubr.f32.mxu0 %v63_v38 }
  0x36   :  { %614 = vmatmul.mubr.f32.gmra.mxu0 %v64_v39 }
  0x37   :  { %616 = vmatprep.mubr.f32.mxu0 %v65_v40 }
  0x3a   :  { %617 = vmatmul.mubr.f32.gmra.mxu0 %v66_v41 }
  0x3b   :  { %619 = vmatprep.mubr.f32.mxu0 %v67_v42 }
  0x3e   :  { %620 = vmatmul.mubr.f32.gmra.mxu0 %v68_v43 }
  0xe2   :  { %v600_v49 = vpop.f32.mrf.mxu0 }
  0xe3   :  { %v289_v50 = vadd.f32 %v600_v49, %v501_v48 }
  0xe4   :  { %v151_v51 = vpop.f32.mrf.mxu0 }
  0xe5   :  { %v288_v52 = vadd.f32 %v501_v48, %v151_v51  ;;  %v305_v55 = vmax.f32 %v289_v50, 0.0 }
  0xe6   :  { %v603_v53 = vpop.f32.mrf.mxu0 }
  0xe7   :  { %v304_v54 = vmax.f32 %v288_v52, 0.0  ;;  %v291_v56 = vadd.f32 %v603_v53, %v501_v48 }
  0xe8   :  { %v161_v57 = vpop.f32.mrf.mxu0 }
  0xe9   :  { %v290_v58 = vadd.f32 %v501_v48, %v161_v57  ;;  %654 = vmatprep.mubr.f32.mxu1 %v304_v54  ;;  %v307_v61 = vmax.f32 %v291_v56, 0.0 }
  0xea   :  { %v606_v59 = vpop.f32.mrf.mxu0  ;;  %655 = vmatmul.mubr.f32.vlgmr.msra.gmra.mxu1 %v305_v55 }
  0xeb   :  { %v306_v60 = vmax.f32 %v290_v58, 0.0  ;;  %v293_v62 = vadd.f32 %v606_v59, %v501_v48 }
  0xec   :  { %v171_v63 = vpop.f32.mrf.mxu0 }
  0xed   :  { %v292_v0 = vadd.f32 %v501_v48, %v171_v63  ;;  %657 = vmatprep.mubr.f32.mxu1 %v306_v60  ;;  %v309_v3 = vmax.f32 %v293_v62, 0.0 }
  0xee   :  { %v609_v1 = vpop.f32.mrf.mxu0  ;;  %658 = vmatmul.mubr.f32.gmra.mxu1 %v307_v61 }
  0xef   :  { %v308_v2 = vmax.f32 %v292_v0, 0.0  ;;  %v295_v4 = vadd.f32 %v609_v1, %v501_v48 }
  0xf0   :  { %v181_v5 = vpop.f32.mrf.mxu0 }
  0xf1   :  { %v294_v6 = vadd.f32 %v501_v48, %v181_v5  ;;  %660 = vmatprep.mubr.f32.mxu1 %v308_v2  ;;  %v311_v9 = vmax.f32 %v295_v4, 0.0 }
  0xf2   :  { %v612_v7 = vpop.f32.mrf.mxu0  ;;  %661 = vmatmul.mubr.f32.gmra.mxu1 %v309_v3 }
  0xf3   :  { %v310_v8 = vmax.f32 %v294_v6, 0.0  ;;  %v297_v10 = vadd.f32 %v612_v7, %v501_v48 }
  0xf4   :  { %v191_v11 = vpop.f32.mrf.mxu0 }
  0xf5   :  { %v296_v12 = vadd.f32 %v501_v48, %v191_v11  ;;  %663 = vmatprep.mubr.f32.mxu1 %v310_v8  ;;  %v313_v15 = vmax.f32 %v297_v10, 0.0 }
  0xf6   :  { %v615_v13 = vpop.f32.mrf.mxu0  ;;  %664 = vmatmul.mubr.f32.gmra.mxu1 %v311_v9 }
  0xf7   :  { %v312_v14 = vmax.f32 %v296_v12, 0.0  ;;  %v299_v16 = vadd.f32 %v615_v13, %v501_v48 }
  0xf8   :  { %v201_v17 = vpop.f32.mrf.mxu0 }
  0xf9   :  { %v298_v18 = vadd.f32 %v501_v48, %v201_v17  ;;  %666 = vmatprep.mubr.f32.mxu1 %v312_v14  ;;  %v315_v21 = vmax.f32 %v299_v16, 0.0 }
  0xfa   :  { %v618_v19 = vpop.f32.mrf.mxu0  ;;  %667 = vmatmul.mubr.f32.gmra.mxu1 %v313_v15 }
  0xfb   :  { %v314_v20 = vmax.f32 %v298_v18, 0.0  ;;  %v301_v22 = vadd.f32 %v618_v19, %v501_v48 }
  0xfc   :  { %v211_v23 = vpop.f32.mrf.mxu0 }
  0xfd   :  { %v300_v24 = vadd.f32 %v501_v48, %v211_v23  ;;  %669 = vmatprep.mubr.f32.mxu1 %v314_v20  ;;  %v317_v27 = vmax.f32 %v301_v22, 0.0 }
  0xfe   :  { %v621_v25 = vpop.f32.mrf.mxu0  ;;  %670 = vmatmul.mubr.f32.gmra.mxu1 %v315_v21 }
  0xff   :  { %v316_v26 = vmax.f32 %v300_v24, 0.0  ;;  %v303_v28 = vadd.f32 %v621_v25, %v501_v48 }
 0x100   :  { %v221_v29 = vpop.f32.mrf.mxu0 }
 0x101   :  { %v302_v30 = vadd.f32 %v501_v48, %v221_v29  ;;  %672 = vmatprep.mubr.f32.mxu1 %v316_v26  ;;  %v319_v32 = vmax.f32 %v303_v28, 0.0 }
 0x102   :  { %673 = vmatmul.mubr.f32.gmra.mxu1 %v317_v27 }
 0x103   :  { %v318_v31 = vmax.f32 %v302_v30, 0.0 }
 0x105   :  { %675 = vmatprep.mubr.f32.mxu1 %v318_v31 }
 0x106   :  { %676 = vmatmul.mubr.f32.gmra.mxu1 %v319_v32 }
 0x1aa   :  { %v656_v33 = vpop.f32.mrf.mxu1 }
 0x1ab   :  { %482 = vst [vmem:[%s902_s4 + $0x8] sm:$0xff] %v656_v33 }
 0x1ac   :  { %v402_v34 = vpop.f32.mrf.mxu1 }
 0x1ad   :  { %481 = vst [vmem:[%s902_s4] sm:$0xff] %v402_v34 }
 0x1ae   :  { %v659_v35 = vpop.f32.mrf.mxu1 }
 0x1af   :  { %484 = vst [vmem:[%s902_s4 + $0x18] sm:$0xff] %v659_v35 }
 0x1b0   :  { %v412_v36 = vpop.f32.mrf.mxu1 }
 0x1b1   :  { %483 = vst [vmem:[%s902_s4 + $0x10] sm:$0xff] %v412_v36 }
 0x1b2   :  { %v662_v37 = vpop.f32.mrf.mxu1 }
 0x1b3   :  { %486 = vst [vmem:[%s902_s4 + $0x28] sm:$0xff] %v662_v37 }
 0x1b4   :  { %v422_v38 = vpop.f32.mrf.mxu1 }
 0x1b5   :  { %485 = vst [vmem:[%s902_s4 + $0x20] sm:$0xff] %v422_v38 }
 0x1b6   :  { %v665_v39 = vpop.f32.mrf.mxu1 }
 0x1b7   :  { %488 = vst [vmem:[%s902_s4 + $0x38] sm:$0xff] %v665_v39 }
 0x1b8   :  { %v432_v40 = vpop.f32.mrf.mxu1 }
 0x1b9   :  { %487 = vst [vmem:[%s902_s4 + $0x30] sm:$0xff] %v432_v40 }
 0x1ba   :  { %v668_v41 = vpop.f32.mrf.mxu1 }
 0x1bb   :  { %490 = vst [vmem:[%s902_s4 + $0x48] sm:$0xff] %v668_v41 }
 0x1bc   :  { %v442_v42 = vpop.f32.mrf.mxu1 }
 0x1bd   :  { %489 = vst [vmem:[%s902_s4 + $0x40] sm:$0xff] %v442_v42 }
 0x1be   :  { %v671_v43 = vpop.f32.mrf.mxu1 }
 0x1bf   :  { %492 = vst [vmem:[%s902_s4 + $0x58] sm:$0xff] %v671_v43 }
 0x1c0   :  { %v452_v44 = vpop.f32.mrf.mxu1 }
 0x1c1   :  { %491 = vst [vmem:[%s902_s4 + $0x50] sm:$0xff] %v452_v44 }
 0x1c2   :  { %v674_v45 = vpop.f32.mrf.mxu1 }
 0x1c3   :  { %494 = vst [vmem:[%s902_s4 + $0x68] sm:$0xff] %v674_v45 }
 0x1c4   :  { %v462_v46 = vpop.f32.mrf.mxu1 }
 0x1c5   :  { %493 = vst [vmem:[%s902_s4 + $0x60] sm:$0xff] %v462_v46 }
 0x1c6   :  { %v677_v47 = vpop.f32.mrf.mxu1 }
 0x1c7   :  { %496 = vst [vmem:[%s902_s4 + $0x78] sm:$0xff] %v677_v47 }
 0x1c8   :  { %v472_v48 = vpop.f32.mrf.mxu1 }
 0x1c9   :  { %495 = vst [vmem:[%s902_s4 + $0x70] sm:$0xff] %v472_v48 }

</bundles_post_ra>
